<compile_context>
chip_gen: v7x
topology: tpu7x:2x2x1
jax: 0.10.0
libtpu: 0.0.40
codegen_flags: <defaults>
</compile_context>

<pallas_src>
import jax
import jax.numpy as jnp
from jax import lax
from jax.experimental import pallas as pl
from jax.experimental.pallas import tpu as pltpu


def _round_up(x: int, m: int) -> int:
    return (x + m - 1) // m * m


def _pad2d(x, rows: int, cols: int):
    r, c = x.shape
    if r == rows and c == cols:
        return x
    return jnp.pad(x, ((0, rows - r), (0, cols - c)))


# --------------------------------------------------------------------------
# Small path: whole-array VMEM blocks, no grid, two MXU matmuls, one store.
# --------------------------------------------------------------------------
def _fused_mm_small(a1, b1, a2, b2, out_dtype, precision):
    mp, k1p = a1.shape
    _, np_ = b1.shape
    _, k2p = a2.shape
    itemsize = jnp.dtype(a1.dtype).itemsize

    def kernel(a1_ref, b1_ref, a2_ref, b2_ref, o_ref):
        acc = jnp.dot(a1_ref[...], b1_ref[...],
                      preferred_element_type=jnp.float32, precision=precision)
        acc = acc + jnp.dot(a2_ref[...], b2_ref[...],
                            preferred_element_type=jnp.float32,
                            precision=precision)
        o_ref[...] = acc.astype(o_ref.dtype)

    flops = 2 * mp * np_ * (k1p + k2p)
    bytes_accessed = (
        (mp * k1p + k1p * np_ + mp * k2p + k2p * np_) * itemsize
        + mp * np_ * jnp.dtype(out_dtype).itemsize
    )
    return pl.pallas_call(
        kernel,
        out_shape=jax.ShapeDtypeStruct((mp, np_), out_dtype),
        in_specs=[pl.BlockSpec(memory_space=pltpu.MemorySpace.VMEM)] * 4,
        out_specs=pl.BlockSpec(memory_space=pltpu.MemorySpace.VMEM),
        compiler_params=pltpu.CompilerParams(
            vmem_limit_bytes=32 * 1024 * 1024,
        ),
        cost_estimate=pl.CostEstimate(
            flops=flops, transcendentals=0, bytes_accessed=bytes_accessed),
    )(a1, b1, a2, b2)


# --------------------------------------------------------------------------
# Tiled path: 3-D grid, single K axis of nk1+nk2 steps over both matmuls,
# f32 VMEM accumulator, output stored only on the last K step.
# --------------------------------------------------------------------------
def _fused_mm_tiled(a1, b1, a2, b2, out_dtype, *, tm, tn, tk, precision):
    mp, k1p = a1.shape
    _, np_ = b1.shape
    _, k2p = a2.shape
    nk1 = k1p // tk
    nk2 = k2p // tk
    grid = (mp // tm, np_ // tn, nk1 + nk2)
    itemsize = jnp.dtype(a1.dtype).itemsize

    def kernel(a1_ref, b1_ref, a2_ref, b2_ref, o_ref, acc_ref):
        k = pl.program_id(2)

        @pl.when(k == 0)
        def _():
            acc_ref[...] = jnp.zeros_like(acc_ref)

        # First nk1 steps accumulate x1 @ x2, remaining nk2 steps x3 @ x4.
        @pl.when(k < nk1)
        def _():
            acc_ref[...] += jnp.dot(a1_ref[...], b1_ref[...],
                                    preferred_element_type=jnp.float32,
                                    precision=precision)

        @pl.when(k >= nk1)
        def _():
            acc_ref[...] += jnp.dot(a2_ref[...], b2_ref[...],
                                    preferred_element_type=jnp.float32,
                                    precision=precision)

        # Cast + store only once per output tile (last K step): saves
        # (nk1+nk2-1) redundant tm*tn cast + vst bursts per tile.
        @pl.when(k == pl.num_programs(2) - 1)
        def _():
            o_ref[...] = acc_ref[...].astype(o_ref.dtype)

    # Clamped index_maps: while the "other" pair is inactive its block index
    # repeats, so Pallas does not re-issue its DMA -> no extra HBM traffic.
    in_specs = [
        pl.BlockSpec((tm, tk), lambda i, j, k: (i, jnp.minimum(k, nk1 - 1))),
        pl.BlockSpec((tk, tn), lambda i, j, k: (jnp.minimum(k, nk1 - 1), j)),
        pl.BlockSpec((tm, tk), lambda i, j, k: (i, jnp.maximum(k - nk1, 0))),
        pl.BlockSpec((tk, tn), lambda i, j, k: (jnp.maximum(k - nk1, 0), j)),
    ]

    flops = 2 * mp * np_ * (k1p + k2p)
    bytes_accessed = (
        (mp * k1p + k1p * np_ + mp * k2p + k2p * np_) * itemsize
        + mp * np_ * jnp.dtype(out_dtype).itemsize
    )

    return pl.pallas_call(
        kernel,
        out_shape=jax.ShapeDtypeStruct((mp, np_), out_dtype),
        grid_spec=pltpu.PrefetchScalarGridSpec(
            num_scalar_prefetch=0,
            grid=grid,
            in_specs=in_specs,
            out_specs=pl.BlockSpec((tm, tn), lambda i, j, k: (i, j)),
            scratch_shapes=[pltpu.VMEM((tm, tn), jnp.float32)],
        ),
        compiler_params=pltpu.CompilerParams(
            # M/N tiles are independent -> megacore / 2-TC (v7x) sharding;
            # K is the reduction axis.
            dimension_semantics=("parallel", "parallel", "arbitrary"),
        ),
        cost_estimate=pl.CostEstimate(
            flops=flops, transcendentals=0, bytes_accessed=bytes_accessed),
    )(a1, b1, a2, b2)


# --------------------------------------------------------------------------
# Public wrapper: x1 @ x2 + x3 @ x4 (torch.mm + torch.mm + add, fused).
# --------------------------------------------------------------------------
def mm_plus_mm(x1, x2, x3, x4, *, use_bf16=False, precision=None):
    """Computes x1 @ x2 + x3 @ x4 with a single fused Pallas kernel.

    Both products share one f32 accumulator; the K reduction runs over
    nk1+nk2 grid steps (tiled path) or two back-to-back MXU passes (small
    path), so the "+" of the mm_plus_mm pattern never touches HBM.
    """
    M, K1 = x1.shape
    K1b, N = x2.shape
    M2, K2 = x3.shape
    K2b, N2 = x4.shape
    assert K1 == K1b and K2 == K2b and M == M2 and N == N2

    out_dtype = jnp.result_type(x1, x2, x3, x4)
    if use_bf16:
        compute_dtype = jnp.bfloat16
        if precision is None:
            precision = lax.Precision.DEFAULT
    else:
        compute_dtype = out_dtype
        if precision is None:
            # torch.mm on f32 inputs implies true-f32 math -> HIGHEST.
            precision = (lax.Precision.HIGHEST
                         if jnp.dtype(out_dtype) == jnp.dtype(jnp.float32)
                         else lax.Precision.DEFAULT)

    x1 = x1.astype(compute_dtype)
    x2 = x2.astype(compute_dtype)
    x3 = x3.astype(compute_dtype)
    x4 = x4.astype(compute_dtype)

    itemsize = jnp.dtype(compute_dtype).itemsize

    # Lane-dense alignment for the small path (zero padding is exact for mm).
    mp_s = _round_up(M, 8)
    np_s = _round_up(N, 128)
    k1_s = _round_up(K1, 128)
    k2_s = _round_up(K2, 128)
    small_bytes = (mp_s * k1_s + k1_s * np_s + mp_s * k2_s + k2_s * np_s
                   + 2 * mp_s * np_s) * itemsize

    if small_bytes <= 8 * 1024 * 1024:
        # Single whole-array VMEM block, no grid, no per-step bookkeeping.
        a1 = _pad2d(x1, mp_s, k1_s)
        b1 = _pad2d(x2, k1_s, np_s)
        a2 = _pad2d(x3, mp_s, k2_s)
        b2 = _pad2d(x4, k2_s, np_s)
        out_p = _fused_mm_small(a1, b1, a2, b2, out_dtype, precision)
    else:
        # Production-size path: 3-D tiled grid with an f32 accumulator.
        tm = 128 if M <= 128 else 256
        tn = 128 if N <= 128 else 256
        tk = max(128, min(512, _round_up(min(K1, K2), 128)))
        mp_t = _round_up(M, tm)
        np_t = _round_up(N, tn)
        k1_t = _round_up(K1, tk)
        k2_t = _round_up(K2, tk)
        a1 = _pad2d(x1, mp_t, k1_t)
        b1 = _pad2d(x2, k1_t, np_t)
        a2 = _pad2d(x3, mp_t, k2_t)
        b2 = _pad2d(x4, k2_t, np_t)
        out_p = _fused_mm_tiled(a1, b1, a2, b2, out_dtype,
                                tm=tm, tn=tn, tk=tk, precision=precision)

    return out_p[:M, :N]


# TODO(synk): the rest of Model.forward (v4 = mm((1,4),(1,2)) shape mismatch,
# 3-tensor torch.max, v6/s1/s2 used before definition) is invalid PyTorch with
# no defined semantics; only the mm_plus_mm fragment is implemented.


if __name__ == "__main__":
    key = jax.random.PRNGKey(0)
    k1, k2, k3, k4 = jax.random.split(key, 4)

    # Module-literal small shapes (3x3; the only mm-compatible reading).
    x1 = jax.random.normal(k1, (3, 3), dtype=jnp.float32)
    x2 = jax.random.normal(k2, (3, 3), dtype=jnp.float32)
    x3 = jax.random.normal(k3, (3, 3), dtype=jnp.float32)
    x4 = jax.random.normal(k4, (3, 3), dtype=jnp.float32)

    out = mm_plus_mm(x1, x2, x3, x4)
    jax.block_until_ready(out)
    assert out.shape == (3, 3)
    ref = (jnp.dot(x1, x2, precision=lax.Precision.HIGHEST)
           + jnp.dot(x3, x4, precision=lax.Precision.HIGHEST))
    assert jnp.allclose(out, ref, atol=1e-4, rtol=1e-4), "small-path mismatch"

    # Larger shapes to exercise the tiled 3-D-grid path (grid (4,4,3)).
    Mb, K1b_, K2b_, Nb = 1024, 1024, 512, 1024
    y1 = jax.random.normal(k1, (Mb, K1b_), dtype=jnp.float32)
    y2 = jax.random.normal(k2, (K1b_, Nb), dtype=jnp.float32)
    y3 = jax.random.normal(k3, (Mb, K2b_), dtype=jnp.float32)
    y4 = jax.random.normal(k4, (K2b_, Nb), dtype=jnp.float32)

    out_big = mm_plus_mm(y1, y2, y3, y4)
    jax.block_until_ready(out_big)
    ref_big = (jnp.dot(y1, y2, precision=lax.Precision.HIGHEST)
               + jnp.dot(y3, y4, precision=lax.Precision.HIGHEST))
    assert jnp.allclose(out_big, ref_big, atol=5e-2, rtol=1e-3), \
        "tiled-path mismatch"

    # Opt-in bf16 path (MXU-native dtype, half the DMA bytes).
    out_bf16 = mm_plus_mm(y1, y2, y3, y4, use_bf16=True)
    jax.block_until_ready(out_bf16)
    assert jnp.allclose(out_bf16, ref_big, atol=2.0, rtol=5e-2), \
        "bf16-path mismatch"

    print("KERNEL_OK")
</pallas_src>

<mosaic_0001>
module attributes {stable_mosaic.version = 11 : i64} {
  func.func @kernel(%arg0: memref<8x128xf32, #tpu.memory_space<vmem>>, %arg1: memref<128x128xf32, #tpu.memory_space<vmem>>, %arg2: memref<8x128xf32, #tpu.memory_space<vmem>>, %arg3: memref<128x128xf32, #tpu.memory_space<vmem>>, %arg4: memref<8x128xf32, #tpu.memory_space<vmem>>) attributes {dimension_semantics = [], scalar_prefetch = 0 : i64, scratch_operands = 0 : i64, tpu.core_type = #tpu.core_type<tc>} {
    %c0 = arith.constant 0 : index
    %c0_0 = arith.constant 0 : index
    %0 = vector.load %arg0[%c0, %c0_0] : memref<8x128xf32, #tpu.memory_space<vmem>>, vector<8x128xf32>
    %c0_1 = arith.constant 0 : index
    %c0_2 = arith.constant 0 : index
    %1 = vector.load %arg1[%c0_1, %c0_2] : memref<128x128xf32, #tpu.memory_space<vmem>>, vector<128x128xf32>
    %cst = arith.constant dense<0.000000e+00> : vector<8x128xf32>
    %2 = tpu.matmul %0, %1, %cst {dimension_numbers = #tpu.dot_dimension_numbers<[1], [0], [0], [1], [0, 0, 1, 1], [], []>, precision = #tpu.contract_precision<fp32>} : vector<8x128xf32>, vector<128x128xf32>, vector<8x128xf32> -> vector<8x128xf32>
    %c0_3 = arith.constant 0 : index
    %c0_4 = arith.constant 0 : index
    %3 = vector.load %arg2[%c0_3, %c0_4] : memref<8x128xf32, #tpu.memory_space<vmem>>, vector<8x128xf32>
    %c0_5 = arith.constant 0 : index
    %c0_6 = arith.constant 0 : index
    %4 = vector.load %arg3[%c0_5, %c0_6] : memref<128x128xf32, #tpu.memory_space<vmem>>, vector<128x128xf32>
    %cst_7 = arith.constant dense<0.000000e+00> : vector<8x128xf32>
    %5 = tpu.matmul %3, %4, %cst_7 {dimension_numbers = #tpu.dot_dimension_numbers<[1], [0], [0], [1], [0, 0, 1, 1], [], []>, precision = #tpu.contract_precision<fp32>} : vector<8x128xf32>, vector<128x128xf32>, vector<8x128xf32> -> vector<8x128xf32>
    %6 = arith.addf %2, %5 : vector<8x128xf32>
    %c0_8 = arith.constant 0 : index
    %c0_9 = arith.constant 0 : index
    %7 = vector.load %arg4[%c0_8, %c0_9] : memref<8x128xf32, #tpu.memory_space<vmem>>, vector<8x128xf32>
    tpu.vector_store %arg4[%c0_8, %c0_9], %6 {strides = array<i32>} : memref<8x128xf32, #tpu.memory_space<vmem>>, vector<8x128xf32>,
    return
  }
}

</mosaic_0001>

<bundles_post_ra>
// kernel: tpu_custom_call.1
= control target key start
LH: loop header
LB: loop body
LE: loop exit
PB: predicated region body
PF: predicated region fallthrough
CT: control target
= control target key end

     0   :  { %9 = vsyncpa [#allocation3], 0  ;;  %s3151_s0 = inlined_call_operand.hbm [shape: f32[8,128], index: 0, kind: input, shape index: {}]   ;;  %s3152_s1 = inlined_call_operand.hbm [shape: f32[128,128], index: 1, kind: input, shape index: {}]   ;;  %s3153_s2 = inlined_call_operand.hbm [shape: f32[8,128], index: 2, kind: input, shape index: {}]   ;;  %s3154_s3 = inlined_call_operand.hbm [shape: f32[128,128], index: 3, kind: input, shape index: {}]   ;;  %s3155_s4 = inlined_call_operand.hbm [shape: f32[8,128], index: 4, kind: output, shape index: {}]  }
   0x1   :  { %10 = vsyncpa [#allocation6], 0 }
   0x2   :  { %11 = vsyncpa [#allocation9], 0 }
   0x3   :  { %12 = vsyncpa [#allocation4], 0  ;;  %s2464_s15 = smov [#allocation5]   ;;  %s2346_s19 = scalar_lea.hbm %s3152_s1, 2048 }
   0x4   :  { %s28_s16 = sshll.u32 %s2464_s15, 4  ;;  %p2347_p0 = scmp.ne.s32.totalorder %s3152_s1, %s2346_s19  ;;  %s29_s16 = int_to_ptr.vmem [resolvable:$true] %s28_s16 }
   0x5   :  { %p2350_p1 = scmp.lt.u32.totalorder %s2346_s19, %s3152_s1 }
   0x7   :  { %p2352_p2 = pnand %p2350_p1, %p2347_p0 }
   0x9   :  { %2355 = shalt.err (!%p2352_p2)
}
   0xa   :  { %s2356_s24 = scalar_lea.vmem %s29_s16, 2048  ;;  %p2361_p4 = scmp.lt.s32.totalorder %s29_s16, %s29_s16 }
   0xb   :  { %p2357_p3 = scmp.ne.s32.totalorder %s29_s16, %s2356_s24  ;;  %p2362_p5 = scmp.lt.s32.totalorder %s2356_s24, %s2356_s24 }
   0xd   :  { %p2363_p6 = por %p2362_p5, %p2361_p4 }
   0xf   :  { %p2364_p7 = pnand %p2363_p6, %p2357_p3 }
  0x11   :  { %2367 = shalt.err (!%p2364_p7)
}
  0x12   :  { %s2465_s25 = smov 128   ;;  %s2466_s26 = smov 8  }
  0x13   :  { %34 = dma.hbm_to_vmem [thread:$0]  %s3152_s1, 2048, %s29_s16, [#allocation6], %s2465_s25, %s2465_s25, %s2466_s26  }
  0x14   :  { %s2467_s29 = smov [#allocation2]   ;;  %s2468_s5 = smov [#allocation7]  }
  0x15   :  { %s19_s30 = sshll.u32 %s2467_s29, 4  ;;  %s41_s6 = sshll.u32 %s2468_s5, 4  ;;  %s20_s30 = int_to_ptr.vmem [resolvable:$true] %s19_s30  ;;  %s42_s6 = int_to_ptr.vmem [resolvable:$true] %s41_s6 }
  0x16   :  { %s2368_s9 = scalar_lea.hbm %s3151_s0, 128 }
  0x17   :  { %p2369_p8 = scmp.ne.s32.totalorder %s3151_s0, %s2368_s9  ;;  %p2372_p9 = scmp.lt.u32.totalorder %s2368_s9, %s3151_s0 }
  0x19   :  { %p2374_p10 = pnand %p2372_p9, %p2369_p8 }
  0x1b   :  { %2377 = shalt.err (!%p2374_p10)
}
  0x1c   :  { %s2378_s1 = scalar_lea.vmem %s20_s30, 128  ;;  %p2383_p12 = scmp.lt.s32.totalorder %s20_s30, %s20_s30 }
  0x1d   :  { %p2379_p11 = scmp.ne.s32.totalorder %s20_s30, %s2378_s1  ;;  %p2384_p13 = scmp.lt.s32.totalorder %s2378_s1, %s2378_s1 }
  0x1f   :  { %p2385_p0 = por %p2384_p13, %p2383_p12 }
  0x21   :  { %p2386_p1 = pnand %p2385_p0, %p2379_p11 }
  0x23   :  { %2389 = shalt.err (!%p2386_p1)
}
  0x24   :  { %22 = dma.hbm_to_vmem [thread:$0]  %s3151_s0, 128, %s20_s30, [#allocation3]  }
  0x25   :  { %s2390_s18 = scalar_lea.hbm %s3153_s2, 128 }
  0x26   :  { %p2391_p2 = scmp.ne.s32.totalorder %s3153_s2, %s2390_s18  ;;  %p2394_p3 = scmp.lt.u32.totalorder %s2390_s18, %s3153_s2 }
  0x28   :  { %p2396_p4 = pnand %p2394_p3, %p2391_p2 }
  0x2a   :  { %2399 = shalt.err (!%p2396_p4)
}
  0x2b   :  { %s2400_s23 = scalar_lea.vmem %s42_s6, 128  ;;  %p2405_p6 = scmp.lt.s32.totalorder %s42_s6, %s42_s6 }
  0x2c   :  { %p2401_p5 = scmp.ne.s32.totalorder %s42_s6, %s2400_s23  ;;  %p2406_p7 = scmp.lt.s32.totalorder %s2400_s23, %s2400_s23 }
  0x2e   :  { %p2407_p8 = por %p2406_p7, %p2405_p6 }
  0x30   :  { %p2408_p9 = pnand %p2407_p8, %p2401_p5 }
  0x32   :  { %2411 = shalt.err (!%p2408_p9)
}
  0x33   :  { %44 = dma.hbm_to_vmem [thread:$0]  %s3153_s2, 128, %s42_s6, [#allocation6]  }
  0x34   :  { %s2469_s27 = smov [#allocation8]   ;;  %s2412_s5 = scalar_lea.hbm %s3154_s3, 2048 }
  0x35   :  { %s50_s28 = sshll.u32 %s2469_s27, 4  ;;  %p2413_p10 = scmp.ne.s32.totalorder %s3154_s3, %s2412_s5  ;;  %s51_s28 = int_to_ptr.vmem [resolvable:$true] %s50_s28 }
  0x36   :  { %p2416_p11 = scmp.lt.u32.totalorder %s2412_s5, %s3154_s3 }
  0x38   :  { %p2418_p12 = pnand %p2416_p11, %p2413_p10 }
  0x3a   :  { %2421 = shalt.err (!%p2418_p12)
}
  0x3b   :  { %s2422_s11 = scalar_lea.vmem %s51_s28, 2048  ;;  %p2427_p0 = scmp.lt.s32.totalorder %s51_s28, %s51_s28 }
  0x3c   :  { %p2423_p13 = scmp.ne.s32.totalorder %s51_s28, %s2422_s11  ;;  %p2428_p1 = scmp.lt.s32.totalorder %s2422_s11, %s2422_s11 }
  0x3e   :  { %p2429_p2 = por %p2428_p1, %p2427_p0 }
  0x40   :  { %p2430_p3 = pnand %p2429_p2, %p2423_p13 }
  0x42   :  { %2433 = shalt.err (!%p2430_p3)
}
  0x43   :  { %56 = dma.hbm_to_vmem [thread:$0]  %s3154_s3, 2048, %s51_s28, [#allocation9], %s2465_s25, %s2465_s25, %s2466_s26  }
  0x44   :  { %2456 = dma.done.wait [#allocation3], 128  }
  0x45   :  { %2457 = vsyncadd [#allocation3], 4294967168 }
  0x46   :  { %2458 = dma.done.wait [#allocation6], 2176  }
  0x47   :  { %2459 = vsyncadd [#allocation6], 4294965120 }
  0x48   :  { %2460 = dma.done.wait [#allocation9], 2048  }
  0x49   :  { %2461 = vsyncadd [#allocation9], 4294965248  ;;  %v3160_v0 = vmov 0.0|0.0   ;;  %vm2471_vm0 = vmmov 0   ;;  %v3156_v1 = vmov 0.0   ;;  %v87_v2 = vld [vmem:[#allocation8] sm:$0xff] }
  0x4a   :  { %2027 = vmatprep.subr.bf16.mxu1 %v3160_v0  ;;  %2171 = vmatprep.subr.bf16.mxu0 %v3160_v0  ;;  %v88_v3 = vld [vmem:[#allocation8 + $0x8] sm:$0xff]  ;;  %v70_v4 = vld [vmem:[#allocation5] sm:$0xff]  ;;  %v104_v5 = vand.u32 4294901760, %v87_v2  ;;  %v71_v7 = vld [vmem:[#allocation5 + $0x8] sm:$0xff]  ;;  %s2473_s3 = smov [#allocation10]  }
  0x4b   :  { %1639 = vmatprep.mubr.msk.f32.mxu1 %vm2471_vm0, %v3156_v1  ;;  %1849 = vmatprep.mubr.msk.f32.mxu0 %vm2471_vm0, %v3156_v1  ;;  %v107_v6 = vand.u32 4294901760, %v88_v3  ;;  %v745_v8 = vand.u32 4294901760, %v70_v4  ;;  %v89_v9 = vld [vmem:[#allocation8 + $0x10] sm:$0xff]  ;;  %v90_v10 = vld [vmem:[#allocation8 + $0x18] sm:$0xff]  ;;  %v748_v11 = vand.u32 4294901760, %v71_v7  ;;  %v72_v14 = vld [vmem:[#allocation5 + $0x10] sm:$0xff] }
  0x4c   :  { %v110_v12 = vand.u32 4294901760, %v89_v9  ;;  %v113_v13 = vand.u32 4294901760, %v90_v10  ;;  %v73_v15 = vld [vmem:[#allocation5 + $0x18] sm:$0xff]  ;;  %v91_v16 = vld [vmem:[#allocation8 + $0x20] sm:$0xff]  ;;  %v92_v18 = vld [vmem:[#allocation8 + $0x28] sm:$0xff]  ;;  %v751_v23 = vand.u32 4294901760, %v72_v14  ;;  %v2568_v32 = vsub.f32 %v87_v2, %v104_v5 }
  0x4d   :  { %v2559_v17 = vpack.c.bf16 %v107_v6, %v104_v5  ;;  %v74_v19 = vld [vmem:[#allocation5 + $0x20] sm:$0xff]  ;;  %v75_v20 = vld [vmem:[#allocation5 + $0x28] sm:$0xff]  ;;  %v2561_v21 = vpack.c.bf16 %v748_v11, %v745_v8  ;;  %v754_v24 = vand.u32 4294901760, %v73_v15  ;;  %v116_v25 = vand.u32 4294901760, %v91_v16  ;;  %v93_v26 = vld [vmem:[#allocation8 + $0x30] sm:$0xff]  ;;  %s1392_s25 = sshll.u32 %s2473_s3, 4  ;;  %s1393_s25 = int_to_ptr.vmem [resolvable:$true] %s1392_s25 }
  0x4e   :  { %v2564_v22 = vpack.c.bf16 %v113_v13, %v110_v12  ;;  %v119_v27 = vand.u32 4294901760, %v92_v18  ;;  %v757_v28 = vand.u32 4294901760, %v74_v19  ;;  %v760_v29 = vand.u32 4294901760, %v75_v20  ;;  %v94_v30 = vld [vmem:[#allocation8 + $0x38] sm:$0xff]  ;;  %v76_v31 = vld [vmem:[#allocation5 + $0x30] sm:$0xff]  ;;  %v77_v36 = vld [vmem:[#allocation5 + $0x38] sm:$0xff]  ;;  %p2439_p5 = scmp.lt.s32.totalorder %s1393_s25, %s1393_s25 }
  0x4f   :  { %3221 = vst [vmem:[#allocation15_spill] sm:$0xff] %v2559_v17  ;;  %3222 = vst [vmem:[#allocation16_spill] sm:$0xff] %v2561_v21  ;;  %2029 = vmatpush3.bf16.msra.mxu1 %v2559_v17  ;;  %2173 = vmatpush3.bf16.msra.mxu0 %v2561_v21  ;;  %v2570_v33 = vsub.f32 %v88_v3, %v107_v6  ;;  %v2572_v34 = vsub.f32 %v70_v4, %v745_v8  ;;  %v122_v40 = vand.u32 4294901760, %v93_v26  ;;  %v95_v41 = vld [vmem:[#allocation8 + $0x40] sm:$0xff]  ;;  %v96_v42 = vld [vmem:[#allocation8 + $0x48] sm:$0xff]  ;;  %s2434_s26 = scalar_lea.vmem %s1393_s25, 128 }
  0x50   :  { %3223 = vst [vmem:[#allocation17_spill] sm:$0xff] %v2564_v22  ;;  %2030 = vmatprep.subr.bf16.mxu1 %v3160_v0  ;;  %2174 = vmatprep.subr.bf16.mxu0 %v3160_v0  ;;  %v2575_v35 = vpack.c.bf16 %v754_v24, %v751_v23  ;;  %v2577_v37 = vsub.f32 %v71_v7, %v748_v11  ;;  %v125_v45 = vand.u32 4294901760, %v94_v30  ;;  %v763_v46 = vand.u32 4294901760, %v76_v31  ;;  %v78_v47 = vld [vmem:[#allocation5 + $0x40] sm:$0xff]  ;;  %v79_v48 = vld [vmem:[#allocation5 + $0x48] sm:$0xff]  ;;  %v97_v53 = vld [vmem:[#allocation8 + $0x50] sm:$0xff]  ;;  %p2435_p4 = scmp.ne.s32.totalorder %s1393_s25, %s2434_s26  ;;  %p2440_p6 = scmp.lt.s32.totalorder %s2434_s26, %s2434_s26 }
  0x51   :  { %v2579_v38 = vsub.f32 %v89_v9, %v110_v12  ;;  %v2581_v39 = vsub.f32 %v90_v10, %v113_v13  ;;  %v2584_v43 = vsub.f32 %v72_v14, %v751_v23  ;;  %v2586_v44 = vpack.c.bf16 %v119_v27, %v116_v25  ;;  %v98_v58 = vld [vmem:[#allocation8 + $0x58] sm:$0xff]  ;;  %v80_v59 = vld [vmem:[#allocation5 + $0x50] sm:$0xff]  ;;  %v81_v60 = vld [vmem:[#allocation5 + $0x58] sm:$0xff] }
  0x52   :  { %3224 = vst [vmem:[#allocation18_spill] sm:$0xff] %v2575_v35  ;;  %v2589_v49 = vsub.f32 %v73_v15, %v754_v24  ;;  %v2592_v50 = vsub.f32 %v91_v16, %v116_v25  ;;  %v2594_v51 = vpack.c.bf16 %v760_v29, %v757_v28  ;;  %v766_v52 = vand.u32 4294901760, %v77_v36  ;;  %v99_v3 = vld [vmem:[#allocation8 + $0x60] sm:$0xff]  ;;  %v100_v4 = vld [vmem:[#allocation8 + $0x68] sm:$0xff]  ;;  %v2616_v13 = vld [vmem:[#allocation5 + $0x60] sm:$0xff]  ;;  %p2441_p7 = por %p2440_p6, %p2439_p5 }
  0x53   :  { %2032 = vmatpush3.bf16.msra.mxu1 %v2564_v22  ;;  %3225 = vst [vmem:[#allocation19_spill] sm:$0xff] %v2586_v44  ;;  %2176 = vmatpush3.bf16.msra.mxu0 %v2575_v35  ;;  %v2597_v54 = vsub.f32 %v92_v18, %v119_v27  ;;  %v2599_v55 = vsub.f32 %v74_v19, %v757_v28  ;;  %v128_v56 = vand.u32 4294901760, %v95_v41  ;;  %v131_v57 = vand.u32 4294901760, %v96_v42  ;;  %v2618_v14 = vld [vmem:[#allocation5 + $0x68] sm:$0xff] }
  0x54   :  { %2033 = vmatprep.subr.bf16.mxu1 %v3160_v0  ;;  %3226 = vst [vmem:[#allocation20_spill] sm:$0xff] %v2594_v51  ;;  %2177 = vmatprep.subr.bf16.mxu0 %v3160_v0  ;;  %v2601_v61 = vsub.f32 %v75_v20, %v760_v29  ;;  %v2603_v62 = vsub.f32 %v93_v26, %v122_v40  ;;  %v769_v63 = vand.u32 4294901760, %v78_v47  ;;  %v772_v2 = vand.u32 4294901760, %v79_v48  ;;  %p2442_p8 = pnand %p2441_p7, %p2435_p4 }
  0x55   :  { %v2606_v5 = vpack.c.bf16 %v125_v45, %v122_v40  ;;  %v2608_v6 = vsub.f32 %v94_v30, %v125_v45  ;;  %v2610_v7 = vpack.c.bf16 %v766_v52, %v763_v46  ;;  %v2612_v8 = vsub.f32 %v76_v31, %v763_v46  ;;  %v86_v30 = vld [vmem:[#allocation7] sm:$0xff]  ;;  %v2652_v45 = vld [vmem:[#allocation5 + $0x70] sm:$0xff] }
  0x56   :  { %v134_v9 = vand.u32 4294901760, %v97_v53  ;;  %v137_v10 = vand.u32 4294901760, %v98_v58  ;;  %v775_v11 = vand.u32 4294901760, %v80_v59  ;;  %v778_v12 = vand.u32 4294901760, %v81_v60 }
  0x57   :  { %2035 = vmatpush3.bf16.msra.mxu1 %v2586_v44  ;;  %3227 = vst [vmem:[#allocation21_spill] sm:$0xff] %v2606_v5  ;;  %3228 = vst [vmem:[#allocation22_spill] sm:$0xff] %v2610_v7  ;;  %2179 = vmatpush3.bf16.msra.mxu0 %v2594_v51  ;;  %v2621_v15 = vsub.f32 %v77_v36, %v766_v52  ;;  %v2623_v16 = vpack.c.bf16 %v131_v57, %v128_v56  ;;  %v140_v18 = vand.u32 4294901760, %v99_v3 }
  0x58   :  { %2036 = vmatprep.subr.bf16.mxu1 %v3160_v0  ;;  %2180 = vmatprep.subr.bf16.mxu0 %v3160_v0  ;;  %v143_v19 = vand.u32 4294901760, %v100_v4  ;;  %v2625_v20 = vsub.f32 %v95_v41, %v128_v56  ;;  %v2627_v23 = vsub.f32 %v96_v42, %v131_v57  ;;  %v2629_v24 = vpack.c.bf16 %v772_v2, %v769_v63  ;;  %v2648_v41 = vld [vmem:[#allocation8 + $0x70] sm:$0xff]  ;;  %v2650_v42 = vld [vmem:[#allocation8 + $0x78] sm:$0xff] }
  0x59   :  { %3229 = vst [vmem:[#allocation23_spill] sm:$0xff] %v2623_v16  ;;  %v2631_v25 = vsub.f32 %v78_v47, %v769_v63  ;;  %v2634_v26 = vsub.f32 %v79_v48, %v772_v2  ;;  %v2636_v27 = vpack.c.bf16 %v137_v10, %v134_v9  ;;  %v781_v28 = vand.u32 4294901760, %v2616_v13  ;;  %v69_v56 = vld [vmem:[#allocation2] sm:$0xff] }
  0x5a   :  { %3230 = vst [vmem:[#allocation24_spill] sm:$0xff] %v2629_v24  ;;  %v784_v29 = vand.u32 4294901760, %v2618_v14  ;;  %v2642_v31 = vsub.f32 %v97_v53, %v134_v9  ;;  %v2644_v36 = vsub.f32 %v98_v58, %v137_v10  ;;  %v2646_v40 = vpack.c.bf16 %v778_v12, %v775_v11  ;;  %v2663_v53 = vld [vmem:[#allocation5 + $0x78] sm:$0xff] }
  0x5b   :  { %2038 = vmatpush3.bf16.msra.mxu1 %v2606_v5  ;;  %3231 = vst [vmem:[#allocation25_spill] sm:$0xff] %v2636_v27  ;;  %2182 = vmatpush3.bf16.msra.mxu0 %v2610_v7  ;;  %v2655_v46 = vsub.f32 %v80_v59, %v775_v11  ;;  %v2657_v47 = vsub.f32 %v81_v60, %v778_v12  ;;  %v2667_v58 = vand.u32 4294901760, %v86_v30  ;;  %v3158_v63 = vand.u32 4294901760, %v2568_v32 }
  0x5c   :  { %2039 = vmatprep.subr.bf16.mxu1 %v3160_v0  ;;  %3232 = vst [vmem:[#allocation26_spill] sm:$0xff] %v2646_v40  ;;  %2183 = vmatprep.subr.bf16.mxu0 %v3160_v0  ;;  %v2659_v48 = vpack.c.bf16 %v143_v19, %v140_v18  ;;  %v2661_v52 = vsub.f32 %v99_v3, %v140_v18  ;;  %v3159_v2 = vand.u32 4294901760, %v2570_v33  ;;  %v2686_v12 = vand.u32 4294901760, %v69_v56 }
  0x5d   :  { %v2665_v57 = vsub.f32 %v100_v4, %v143_v19  ;;  %v2672_v59 = vpack.c.bf16 %v784_v29, %v781_v28  ;;  %v2681_v10 = vsub.f32 %v86_v30, %v2667_v58  ;;  %v198_v11 = vsub.f32 %v2568_v32, %v3158_v63 }
  0x5e   :  { %3233 = vst [vmem:[#allocation27_spill] sm:$0xff] %v2659_v48  ;;  %v205_v18 = vsub.f32 %v2570_v33, %v3159_v2  ;;  %v3162_v19 = vand.u32 4294901760, %v2572_v34  ;;  %v3165_v1 = vand.u32 4294901760, %v2577_v37  ;;  %v3166_v4 = vand.u32 4294901760, %v2579_v38 }
  0x5f   :  { %2041 = vmatpush3.bf16.msra.mxu1 %v2623_v16  ;;  %3234 = vst [vmem:[#allocation28_spill] sm:$0xff] %v2672_v59  ;;  %2185 = vmatpush3.bf16.msra.mxu0 %v2629_v24  ;;  %3235 = vst [vmem:[#allocation29_spill] sm:$0xff] %v2681_v10  ;;  %v3171_v30 = vand.u32 4294901760, %v2681_v10  ;;  %v199_v9 = vand.u32 4294901760, %v198_v11  ;;  %v2697_v3 = vsub.f32 %v69_v56, %v2686_v12  ;;  %v3237_v56 = vmov 0.0|0.0  }
  0x60   :  { %2042 = vmatprep.subr.bf16.mxu1 %v3160_v0  ;;  %2186 = vmatprep.subr.bf16.mxu0 %v3160_v0  ;;  %v206_v60 = vand.u32 4294901760, %v205_v18  ;;  %v839_v2 = vsub.f32 %v2572_v34, %v3162_v19  ;;  %v846_v0 = vsub.f32 %v2577_v37, %v3165_v1  ;;  %v212_v11 = vsub.f32 %v2579_v38, %v3166_v4 }
  0x61   :  { %3236 = vst [vmem:[#allocation30_spill] sm:$0xff] %v2697_v3  ;;  %v187_v18 = vsub.f32 %v2681_v10, %v3171_v30  ;;  %v3238_v19 = vand.u32 4294901760, %v2581_v39  ;;  %v2722_v4 = vsub.f32 %v2616_v13, %v781_v28  ;;  %v3240_v24 = vand.u32 4294901760, %v2648_v41 }
  0x62   :  { %v3241_v30 = vand.u32 4294901760, %v2650_v42  ;;  %v3243_v63 = vand.u32 4294901760, %v2652_v45  ;;  %v2052_v1 = vpack.c.bf16 %v206_v60, %v199_v9  ;;  %v3246_v5 = vand.u32 4294901760, %v2697_v3 }
  0x63   :  { %2044 = vmatpush3.bf16.msra.mxu1 %v2636_v27  ;;  %2188 = vmatpush3.bf16.msra.mxu0 %v2646_v40  ;;  %v219_v27 = vsub.f32 %v2581_v39, %v3238_v19  ;;  %v2725_v40 = vsub.f32 %v2618_v14, %v784_v29  ;;  %v3244_v19 = vand.u32 4294901760, %v2663_v53  ;;  %v840_v28 = vand.u32 4294901760, %v839_v2 }
  0x64   :  { %2045 = vmatprep.subr.bf16.mxu1 %v3237_v56  ;;  %2189 = vmatprep.subr.bf16.mxu0 %v3237_v56  ;;  %v2731_v16 = vpack.c.bf16 %v3241_v30, %v3240_v24  ;;  %v828_v13 = vsub.f32 %v2697_v3, %v3246_v5  ;;  %v847_v14 = vand.u32 4294901760, %v846_v0  ;;  %v3247_v29 = vand.u32 4294901760, %v2584_v43 }
  0x65   :  { %3239 = vst [vmem:[#allocation31_spill] sm:$0xff] %v2725_v40  ;;  %v2737_v7 = vpack.c.bf16 %v3244_v19, %v3243_v63  ;;  %v3182_v30 = vand.u32 4294901760, %v2589_v49  ;;  %v3185_v51 = vand.u32 4294901760, %v2592_v50  ;;  %v3191_v63 = vand.u32 4294901760, %v2597_v54 }
  0x66   :  { %3242 = vst [vmem:[#allocation32_spill] sm:$0xff] %v2731_v16  ;;  %v853_v24 = vsub.f32 %v2584_v43, %v3247_v29  ;;  %v188_v60 = vand.u32 4294901760, %v187_v18  ;;  %v213_v5 = vand.u32 4294901760, %v212_v11  ;;  %v220_v2 = vand.u32 4294901760, %v219_v27 }
  0x67   :  { %3245 = vst [vmem:[#allocation33_spill] sm:$0xff] %v2737_v7  ;;  %2047 = vmatpush3.bf16.msra.mxu1 %v2659_v48  ;;  %2191 = vmatpush3.bf16.msra.mxu0 %v2672_v59  ;;  %v3190_v0 = vand.u32 4294901760, %v2599_v55  ;;  %v860_v9 = vsub.f32 %v2589_v49, %v3182_v30  ;;  %v226_v19 = vsub.f32 %v2592_v50, %v3185_v51  ;;  %v3192_v18 = vand.u32 4294901760, %v2601_v61 }
  0x68   :  { %2048 = vmatprep.subr.bf16.mxu1 %v3237_v56  ;;  %2192 = vmatprep.subr.bf16.mxu0 %v3237_v56  ;;  %v233_v29 = vsub.f32 %v2597_v54, %v3191_v63  ;;  %v3195_v11 = vand.u32 4294901760, %v2603_v62  ;;  %v3198_v59 = vand.u32 4294901760, %v2608_v6  ;;  %v829_v48 = vand.u32 4294901760, %v828_v13 }
  0x69   :  { %v867_v27 = vsub.f32 %v2599_v55, %v3190_v0  ;;  %v2196_v51 = vpack.c.bf16 %v847_v14, %v840_v28  ;;  %v854_v44 = vand.u32 4294901760, %v853_v24  ;;  %v861_v35 = vand.u32 4294901760, %v860_v9 }
  0x6a   :  { %v874_v0 = vsub.f32 %v2601_v61, %v3192_v18  ;;  %v240_v63 = vsub.f32 %v2603_v62, %v3195_v11  ;;  %v247_v30 = vsub.f32 %v2608_v6, %v3198_v59  ;;  %v3248_v13 = vand.u32 4294901760, %v2648_v41 }
  0x6b   :  { %2050 = vmatpush3.bf16.msra.mxu1 %v2731_v16  ;;  %2194 = vmatpush3.bf16.msra.mxu0 %v2737_v7  ;;  %v2055_v14 = vpack.c.bf16 %v220_v2, %v213_v5  ;;  %v227_v24 = vand.u32 4294901760, %v226_v19  ;;  %v3205_v9 = vand.u32 4294901760, %v2621_v15  ;;  %v234_v18 = vand.u32 4294901760, %v233_v29 }
  0x6c   :  { %2051 = vmatprep.subr.bf16.mxu1 %v3237_v56  ;;  %v2784_v28 = vsub.f32 %v2648_v41, %v3248_v13  ;;  %2195 = vmatprep.subr.bf16.mxu0 %v3237_v56  ;;  %v868_v7 = vand.u32 4294901760, %v867_v27  ;;  %v3249_v11 = vand.u32 4294901760, %v2612_v8  ;;  %v3203_v59 = vand.u32 4294901760, %v2625_v20 }
  0x6d   :  { %v2199_v22 = vpack.c.bf16 %v861_v35, %v854_v44  ;;  %v888_v41 = vsub.f32 %v2621_v15, %v3205_v9  ;;  %v3201_v5 = vand.u32 4294901760, %v2627_v23  ;;  %v3202_v2 = vand.u32 4294901760, %v2631_v25 }
  0x6e   :  { %1640 = vmatmul.mubr.f32.vlgmr.msra.gmra.mrb[0].mxu1 %v188_v60  ;;  %v881_v16 = vsub.f32 %v2612_v8, %v3249_v11  ;;  %1850 = vmatmul.mubr.f32.vlgmr.msra.gmra.mrb[0].mxu0 %v829_v48  ;;  %v875_v60 = vand.u32 4294901760, %v874_v0  ;;  %v241_v19 = vand.u32 4294901760, %v240_v63  ;;  %v248_v29 = vand.u32 4294901760, %v247_v30 }
  0x6f   :  { %2053 = vmatpush3.bf16.msra.mxu1 %v2052_v1  ;;  %2197 = vmatpush3.bf16.msra.mxu0 %v2196_v51  ;;  %v3204_v27 = vand.u32 4294901760, %v2634_v26  ;;  %v3250_v1 = vand.u32 4294901760, %v2650_v42  ;;  %v3251_v44 = vand.u32 4294901760, %v2652_v45  ;;  %v254_v51 = vsub.f32 %v2625_v20, %v3203_v59 }
  0x70   :  { %2054 = vmatprep.subr.bf16.mxu1 %v3237_v56  ;;  %2198 = vmatprep.subr.bf16.mxu0 %v3237_v56  ;;  %v3209_v30 = vand.u32 4294901760, %v2642_v31  ;;  %v3252_v63 = vmov 0.0   ;;  %v882_v0 = vand.u32 4294901760, %v881_v16  ;;  %v889_v11 = vand.u32 4294901760, %v888_v41 }
  0x71   :  { %v2802_v35 = vsub.f32 %v2650_v42, %v3250_v1  ;;  %v2807_v48 = vsub.f32 %v2652_v45, %v3251_v44  ;;  %1674 = vmatprep.mubr.msk.f32.mxu1 %vm2471_vm0, %v3252_v63  ;;  %v261_v42 = vsub.f32 %v2627_v23, %v3201_v5  ;;  %v895_v45 = vsub.f32 %v2631_v25, %v3202_v2 }
  0x72   :  { %1884 = vmatprep.mubr.msk.f32.mxu0 %vm2471_vm0, %v3252_v63  ;;  %v2058_v13 = vpack.c.bf16 %v234_v18, %v227_v24  ;;  %v902_v1 = vsub.f32 %v2634_v26, %v3204_v27  ;;  %v3208_v16 = vand.u32 4294901760, %v2644_v36  ;;  %v3253_v44 = vand.u32 4294901760, %v2663_v53 }
  0x73   :  { %2056 = vmatpush3.bf16.msra.mxu1 %v2055_v14  ;;  %2200 = vmatpush3.bf16.msra.mxu0 %v2199_v22  ;;  %v2202_v2 = vpack.c.bf16 %v875_v60, %v868_v7  ;;  %v2061_v59 = vpack.c.bf16 %v248_v29, %v241_v19  ;;  %v3206_v18 = vand.u32 4294901760, %v2657_v47  ;;  %v255_v14 = vand.u32 4294901760, %v254_v51 }
  0x74   :  { %v2832_v5 = vsub.f32 %v2663_v53, %v3253_v44  ;;  %2057 = vmatprep.subr.bf16.mxu1 %v3237_v56  ;;  %2201 = vmatprep.subr.bf16.mxu0 %v3237_v56  ;;  %v268_v24 = vsub.f32 %v2642_v31, %v3209_v30  ;;  %v3207_v27 = vand.u32 4294901760, %v2661_v52  ;;  %v3210_v9 = vand.u32 4294901760, %v2665_v57 }
  0x75   :  { %v2205_v53 = vpack.c.bf16 %v889_v11, %v882_v0  ;;  %v262_v44 = vand.u32 4294901760, %v261_v42  ;;  %v896_v22 = vand.u32 4294901760, %v895_v45  ;;  %v3215_v41 = vand.u32 4294901760, %v2722_v4 }
  0x76   :  { %v903_v7 = vand.u32 4294901760, %v902_v1  ;;  %v275_v60 = vsub.f32 %v2644_v36, %v3208_v16  ;;  %v3254_v19 = vand.u32 4294901760, %v2655_v46  ;;  %v929_v51 = vand.u32 4294901760, %v2725_v40 }
  0x77   :  { %2059 = vmatpush3.bf16.msra.mxu1 %v2058_v13  ;;  %2203 = vmatpush3.bf16.msra.mxu0 %v2202_v2  ;;  %v916_v0 = vsub.f32 %v2657_v47, %v3206_v18  ;;  %v282_v11 = vsub.f32 %v2661_v52, %v3207_v27  ;;  %v289_v42 = vsub.f32 %v2665_v57, %v3210_v9  ;;  %v295_v13 = vand.u32 4294901760, %v2784_v28 }
  0x78   :  { %v909_v29 = vsub.f32 %v2655_v46, %v3254_v19  ;;  %2060 = vmatprep.subr.bf16.mxu1 %v3237_v56  ;;  %2204 = vmatprep.subr.bf16.mxu0 %v3237_v56  ;;  %v923_v2 = vsub.f32 %v2722_v4, %v3215_v41  ;;  %v930_v45 = vsub.f32 %v2725_v40, %v929_v51  ;;  %v302_v1 = vand.u32 4294901760, %v2802_v35 }
  0x79   :  { %v269_v19 = vand.u32 4294901760, %v268_v24  ;;  %v936_v18 = vand.u32 4294901760, %v2807_v48  ;;  %v2064_v27 = vpack.c.bf16 %v262_v44, %v255_v14  ;;  %v2208_v16 = vpack.c.bf16 %v903_v7, %v896_v22 }
  0x7a   :  { %v276_v30 = vand.u32 4294901760, %v275_v60  ;;  %v910_v9 = vand.u32 4294901760, %v909_v29  ;;  %v917_v21 = vand.u32 4294901760, %v916_v0  ;;  %v283_v3 = vand.u32 4294901760, %v282_v11 }
  0x7b   :  { %2062 = vmatpush3.bf16.msra.mxu1 %v2061_v59  ;;  %2206 = vmatpush3.bf16.msra.mxu0 %v2205_v53  ;;  %v290_v41 = vand.u32 4294901760, %v289_v42  ;;  %v943_v17 = vand.u32 4294901760, %v2832_v5  ;;  %v924_v10 = vand.u32 4294901760, %v923_v2  ;;  %v931_v40 = vand.u32 4294901760, %v930_v45 }
  0x7c   :  { %2063 = vmatprep.subr.bf16.mxu1 %v3237_v56  ;;  %2207 = vmatprep.subr.bf16.mxu0 %v3237_v56  ;;  %v296_v24 = vsub.f32 %v2784_v28, %v295_v13  ;;  %v303_v59 = vsub.f32 %v2802_v35, %v302_v1  ;;  %v937_v14 = vsub.f32 %v2807_v48, %v936_v18  ;;  %v3255_v42 = vand.u32 4294901760, %v2568_v32 }
  0x7d   :  { %v2067_v44 = vpack.c.bf16 %v276_v30, %v269_v19  ;;  %v2211_v53 = vpack.c.bf16 %v917_v21, %v910_v9  ;;  %v944_v22 = vsub.f32 %v2832_v5, %v943_v17  ;;  %v2070_v7 = vpack.c.bf16 %v290_v41, %v283_v3 }
  0x7e   :  { %v2214_v60 = vpack.c.bf16 %v931_v40, %v924_v10  ;;  %v297_v29 = vand.u32 4294901760, %v296_v24  ;;  %v304_v0 = vand.u32 4294901760, %v303_v59  ;;  %v938_v11 = vand.u32 4294901760, %v937_v14 }
  0x7f   :  { %2065 = vmatpush3.bf16.msra.mxu1 %v2064_v27  ;;  %2209 = vmatpush3.bf16.msra.mxu0 %v2208_v16  ;;  %v3256_v2 = vand.u32 4294901760, %v2570_v33  ;;  %v3257_v27 = vand.u32 4294901760, %v2572_v34  ;;  %v3258_v30 = vand.u32 4294901760, %v2577_v37  ;;  %v3259_v9 = vand.u32 4294901760, %v2579_v38 }
  0x80   :  { %2066 = vmatprep.subr.bf16.mxu1 %v3237_v56  ;;  %2210 = vmatprep.subr.bf16.mxu0 %v3237_v56  ;;  %v3260_v3 = vand.u32 4294901760, %v2581_v39  ;;  %v3261_v10 = vand.u32 4294901760, %v2584_v43  ;;  %v3262_v16 = vand.u32 4294901760, %v2589_v49  ;;  %v3263_v19 = vand.u32 4294901760, %v2592_v50 }
  0x81   :  { %v2881_v45 = vpack.c.bf16 %v3256_v2, %v3255_v42  ;;  %v2887_v21 = vpack.c.bf16 %v3258_v30, %v3257_v27  ;;  %v3264_v24 = vand.u32 4294901760, %v2597_v54  ;;  %v3265_v14 = vand.u32 4294901760, %v2599_v55 }
  0x82   :  { %v2893_v40 = vpack.c.bf16 %v3260_v3, %v3259_v9  ;;  %v2899_v41 = vpack.c.bf16 %v3262_v16, %v3261_v10  ;;  %v3266_v42 = vand.u32 4294901760, %v2601_v61  ;;  %v3268_v27 = vand.u32 4294901760, %v2608_v6 }
  0x83   :  { %2068 = vmatpush3.bf16.msra.mxu1 %v2067_v44  ;;  %v2905_v59 = vpack.c.bf16 %v3264_v24, %v3263_v19  ;;  %v3267_v44 = vand.u32 4294901760, %v2603_v62  ;;  %2212 = vmatpush3.bf16.msra.mxu0 %v2211_v53  ;;  %v945_v9 = vand.u32 4294901760, %v944_v22  ;;  %v3270_v3 = vand.u32 4294901760, %v2612_v8 }
  0x84   :  { %v2911_v2 = vpack.c.bf16 %v3266_v42, %v3265_v14  ;;  %2069 = vmatprep.subr.bf16.mxu1 %v3237_v56  ;;  %v3271_v10 = vand.u32 4294901760, %v2621_v15  ;;  %v3273_v19 = vand.u32 4294901760, %v2625_v20  ;;  %v3274_v24 = vand.u32 4294901760, %v2627_v23  ;;  %2213 = vmatprep.subr.bf16.mxu0 %v3237_v56 }
  0x85   :  { %v2917_v30 = vpack.c.bf16 %v3268_v27, %v3267_v44  ;;  %v3276_v42 = vand.u32 4294901760, %v2631_v25  ;;  %v3277_v44 = vand.u32 4294901760, %v2634_v26  ;;  %v3279_v22 = vand.u32 4294901760, %v2642_v31 }
  0x86   :  { %v2924_v16 = vpack.c.bf16 %v3271_v10, %v3270_v3  ;;  %v2930_v14 = vpack.c.bf16 %v3274_v24, %v3273_v19  ;;  %v3280_v27 = vand.u32 4294901760, %v2644_v36  ;;  %v3281_v10 = vand.u32 4294901760, %v2655_v46 }
  0x87   :  { %3269 = vst [vmem:[#allocation34_spill] sm:$0xff] %v2917_v30  ;;  %v2936_v53 = vpack.c.bf16 %v3277_v44, %v3276_v42  ;;  %v3283_v24 = vand.u32 4294901760, %v2661_v52  ;;  %v3285_v44 = vand.u32 4294901760, %v2722_v4  ;;  %v2961_v30 = vpack.c.bf16 %v302_v1, %v295_v13  ;;  %2071 = vmatpush3.bf16.msra.mxu1 %v2070_v7  ;;  %2215 = vmatpush3.bf16.msra.mxu0 %v2214_v60 }
  0x88   :  { %3272 = vst [vmem:[#allocation35_spill] sm:$0xff] %v2924_v16  ;;  %3275 = vst [vmem:[#allocation36_spill] sm:$0xff] %v2930_v14  ;;  %v2943_v3 = vpack.c.bf16 %v3280_v27, %v3279_v22  ;;  %v3282_v16 = vand.u32 4294901760, %v2657_v47  ;;  %v3284_v14 = vand.u32 4294901760, %v2665_v57  ;;  %v2963_v22 = vpack.c.bf16 %v943_v17, %v936_v18  ;;  %2072 = vmatprep.subr.bf16.mxu1 %v3237_v56  ;;  %v3304_v18 = vld [vmem:[#allocation33_spill] sm:$0xff] }
  0x89   :  { %3278 = vst [vmem:[#allocation37_spill] sm:$0xff] %v2936_v53  ;;  %v2959_v53 = vpack.c.bf16 %v929_v51, %v3285_v44  ;;  %v2073_v27 = vpack.c.bf16 %v304_v0, %v297_v29  ;;  %2216 = vmatprep.subr.bf16.mxu0 %v3237_v56  ;;  %v2220_v51 = vpack.c.bf16 %v2577_v37, %v2572_v34 }
  0x8a   :  { %v2949_v19 = vpack.c.bf16 %v3282_v16, %v3281_v10  ;;  %v2955_v42 = vpack.c.bf16 %v3284_v14, %v3283_v24  ;;  %v2217_v16 = vpack.c.bf16 %v945_v9, %v938_v11  ;;  %v2076_v14 = vpack.c.bf16 %v2570_v33, %v2568_v32 }
  0x8b   :  { %2074 = vmatpush3.bf16.msra.mxu1 %v2073_v27  ;;  %v2079_v17 = vpack.c.bf16 %v2581_v39, %v2579_v38  ;;  %v2223_v32 = vpack.c.bf16 %v2589_v49, %v2584_v43  ;;  %v2082_v33 = vpack.c.bf16 %v2597_v54, %v2592_v50  ;;  %v2226_v34 = vpack.c.bf16 %v2601_v61, %v2599_v55  ;;  %v3286_v55 = vld [vmem:[#allocation31_spill] sm:$0xff] }
  0x8c   :  { %2218 = vmatpush3.bf16.msra.mxu0 %v2217_v16  ;;  %2075 = vmatprep.subr.bf16.mxu1 %v3237_v56  ;;  %v2085_v37 = vpack.c.bf16 %v2608_v6, %v2603_v62  ;;  %v2229_v38 = vpack.c.bf16 %v2621_v15, %v2612_v8  ;;  %v2088_v39 = vpack.c.bf16 %v2627_v23, %v2625_v20  ;;  %v3287_v8 = vld [vmem:[#allocation29_spill] sm:$0xff]  ;;  %v3288_v15 = vld [vmem:[#allocation15_spill] sm:$0xff]  ;;  %v3289_v20 = vld [vmem:[#allocation30_spill] sm:$0xff] }
  0x8d   :  { %2219 = vmatprep.subr.bf16.mxu0 %v3237_v56  ;;  %v2232_v43 = vpack.c.bf16 %v2634_v26, %v2631_v25  ;;  %v2091_v49 = vpack.c.bf16 %v2644_v36, %v2642_v31  ;;  %v2235_v50 = vpack.c.bf16 %v2657_v47, %v2655_v46  ;;  %v2094_v54 = vpack.c.bf16 %v2665_v57, %v2661_v52  ;;  %v3290_v23 = vld [vmem:[#allocation16_spill] sm:$0xff]  ;;  %v3291_v25 = vld [vmem:[#allocation17_spill] sm:$0xff]  ;;  %v3292_v26 = vld [vmem:[#allocation18_spill] sm:$0xff] }
  0x8e   :  { %1675 = vmatmul.mubr.f32.vlgmr.msra.gmra.mrb[0].mxu1 %v2667_v58  ;;  %v2238_v61 = vpack.c.bf16 %v3286_v55, %v2722_v4  ;;  %v2097_v62 = vpack.c.bf16 %v2802_v35, %v2784_v28  ;;  %v2241_v6 = vpack.c.bf16 %v2832_v5, %v2807_v48  ;;  %v3293_v31 = vld [vmem:[#allocation19_spill] sm:$0xff]  ;;  %v3294_v36 = vld [vmem:[#allocation20_spill] sm:$0xff]  ;;  %v3295_v46 = vld [vmem:[#allocation21_spill] sm:$0xff]  ;;  %v3305_v13 = vand.u32 4294901760, %v3287_v8 }
  0x8f   :  { %2077 = vmatpush3.bf16.msra.mxu1 %v2076_v14  ;;  %1885 = vmatmul.mubr.f32.vlgmr.msra.gmra.mrb[0].mxu0 %v2686_v12  ;;  %v3296_v47 = vld [vmem:[#allocation22_spill] sm:$0xff]  ;;  %v3297_v52 = vld [vmem:[#allocation23_spill] sm:$0xff]  ;;  %v3298_v57 = vld [vmem:[#allocation24_spill] sm:$0xff]  ;;  %v3306_v1 = vand.u32 4294901760, %v3289_v20 }
  0x90   :  { %2221 = vmatpush3.bf16.msra.mxu0 %v2220_v51  ;;  %2078 = vmatprep.subr.bf16.mxu1 %v3237_v56  ;;  %v3299_v4 = vld [vmem:[#allocation25_spill] sm:$0xff]  ;;  %v3300_v28 = vld [vmem:[#allocation26_spill] sm:$0xff]  ;;  %v3301_v5 = vld [vmem:[#allocation27_spill] sm:$0xff] }
  0x91   :  { %2222 = vmatprep.subr.bf16.mxu0 %v3237_v56  ;;  %1709 = vmatprep.mubr.msk.f32.mxu1 %vm2471_vm0, %v3252_v63  ;;  %v3302_v35 = vld [vmem:[#allocation28_spill] sm:$0xff]  ;;  %v3307_v7 = vld [vmem:[#allocation34_spill] sm:$0xff]  ;;  %v3308_v60 = vld [vmem:[#allocation35_spill] sm:$0xff] }
  0x92   :  { %1919 = vmatprep.mubr.msk.f32.mxu0 %vm2471_vm0, %v3252_v63  ;;  %v3303_v48 = vld [vmem:[#allocation32_spill] sm:$0xff]  ;;  %v3310_v0 = vld [vmem:[#allocation37_spill] sm:$0xff] }
  0x93   :  { %2080 = vmatpush3.bf16.msra.mxu1 %v2079_v17  ;;  %v3309_v29 = vld [vmem:[#allocation36_spill] sm:$0xff] }
  0x94   :  { %2224 = vmatpush3.bf16.msra.mxu0 %v2223_v32  ;;  %2081 = vmatprep.subr.bf16.mxu1 %v3237_v56 }
  0x95   :  { %2225 = vmatprep.subr.bf16.mxu0 %v3237_v56 }
  0x97   :  { %2083 = vmatpush3.bf16.msra.mxu1 %v2082_v33 }
  0x98   :  { %2227 = vmatpush3.bf16.msra.mxu0 %v2226_v34  ;;  %2084 = vmatprep.subr.bf16.mxu1 %v3237_v56 }
  0x99   :  { %2228 = vmatprep.subr.bf16.mxu0 %v3237_v56 }
  0x9b   :  { %2086 = vmatpush3.bf16.msra.mxu1 %v2085_v37 }
  0x9c   :  { %2230 = vmatpush3.bf16.msra.mxu0 %v2229_v38  ;;  %2087 = vmatprep.subr.bf16.mxu1 %v3237_v56 }
  0x9d   :  { %2231 = vmatprep.subr.bf16.mxu0 %v3237_v56 }
  0x9f   :  { %2089 = vmatpush3.bf16.msra.mxu1 %v2088_v39 }
  0xa0   :  { %2233 = vmatpush3.bf16.msra.mxu0 %v2232_v43  ;;  %2090 = vmatprep.subr.bf16.mxu1 %v3237_v56 }
  0xa1   :  { %2234 = vmatprep.subr.bf16.mxu0 %v3237_v56 }
  0xa3   :  { %2092 = vmatpush3.bf16.msra.mxu1 %v2091_v49 }
  0xa4   :  { %2236 = vmatpush3.bf16.msra.mxu0 %v2235_v50  ;;  %2093 = vmatprep.subr.bf16.mxu1 %v3237_v56 }
  0xa5   :  { %2237 = vmatprep.subr.bf16.mxu0 %v3237_v56 }
  0xa7   :  { %2095 = vmatpush3.bf16.msra.mxu1 %v2094_v54 }
  0xa8   :  { %2239 = vmatpush3.bf16.msra.mxu0 %v2238_v61  ;;  %2096 = vmatprep.subr.bf16.mxu1 %v3237_v56 }
  0xa9   :  { %2240 = vmatprep.subr.bf16.mxu0 %v3237_v56 }
  0xab   :  { %2098 = vmatpush3.bf16.msra.mxu1 %v2097_v62 }
  0xac   :  { %2242 = vmatpush3.bf16.msra.mxu0 %v2241_v6  ;;  %2099 = vmatprep.subr.bf16.mxu1 %v3237_v56 }
  0xad   :  { %2243 = vmatprep.subr.bf16.mxu0 %v3237_v56 }
  0xae   :  { %1710 = vmatmul.mubr.f32.vlgmr.msra.gmra.mrb[0].mxu1 %v3287_v8 }
  0xaf   :  { %2101 = vmatpush3.bf16.msra.mxu1 %v3288_v15  ;;  %1920 = vmatmul.mubr.f32.vlgmr.msra.gmra.mrb[0].mxu0 %v3289_v20 }
  0xb0   :  { %2245 = vmatpush3.bf16.msra.mxu0 %v3290_v23  ;;  %2102 = vmatprep.subr.bf16.mxu1 %v3237_v56 }
  0xb1   :  { %2246 = vmatprep.subr.bf16.mxu0 %v3237_v56  ;;  %1744 = vmatprep.mubr.msk.f32.mxu1 %vm2471_vm0, %v3252_v63 }
  0xb2   :  { %1954 = vmatprep.mubr.msk.f32.mxu0 %vm2471_vm0, %v3252_v63 }
  0xb3   :  { %2104 = vmatpush3.bf16.msra.mxu1 %v3291_v25 }
  0xb4   :  { %2248 = vmatpush3.bf16.msra.mxu0 %v3292_v26  ;;  %2105 = vmatprep.subr.bf16.mxu1 %v3237_v56 }
  0xb5   :  { %2249 = vmatprep.subr.bf16.mxu0 %v3237_v56 }
  0xb7   :  { %2107 = vmatpush3.bf16.msra.mxu1 %v3293_v31 }
  0xb8   :  { %2251 = vmatpush3.bf16.msra.mxu0 %v3294_v36  ;;  %2108 = vmatprep.subr.bf16.mxu1 %v3237_v56 }
  0xb9   :  { %2252 = vmatprep.subr.bf16.mxu0 %v3237_v56 }
  0xbb   :  { %2110 = vmatpush3.bf16.msra.mxu1 %v3295_v46 }
  0xbc   :  { %2254 = vmatpush3.bf16.msra.mxu0 %v3296_v47  ;;  %2111 = vmatprep.subr.bf16.mxu1 %v3237_v56 }
  0xbd   :  { %2255 = vmatprep.subr.bf16.mxu0 %v3237_v56 }
  0xbf   :  { %2113 = vmatpush3.bf16.msra.mxu1 %v3297_v52 }
  0xc0   :  { %2257 = vmatpush3.bf16.msra.mxu0 %v3298_v57  ;;  %2114 = vmatprep.subr.bf16.mxu1 %v3237_v56 }
  0xc1   :  { %2258 = vmatprep.subr.bf16.mxu0 %v3237_v56 }
  0xc3   :  { %2116 = vmatpush3.bf16.msra.mxu1 %v3299_v4 }
  0xc4   :  { %2260 = vmatpush3.bf16.msra.mxu0 %v3300_v28  ;;  %2117 = vmatprep.subr.bf16.mxu1 %v3237_v56 }
  0xc5   :  { %2261 = vmatprep.subr.bf16.mxu0 %v3237_v56 }
  0xc7   :  { %2119 = vmatpush3.bf16.msra.mxu1 %v3301_v5 }
  0xc8   :  { %2263 = vmatpush3.bf16.msra.mxu0 %v3302_v35  ;;  %2120 = vmatprep.subr.bf16.mxu1 %v3237_v56 }
  0xc9   :  { %2264 = vmatprep.subr.bf16.mxu0 %v3237_v56 }
  0xcb   :  { %2122 = vmatpush3.bf16.msra.mxu1 %v3303_v48 }
  0xcc   :  { %2266 = vmatpush3.bf16.msra.mxu0 %v3304_v18  ;;  %2123 = vmatprep.subr.bf16.mxu1 %v3237_v56 }
  0xcd   :  { %2267 = vmatprep.subr.bf16.mxu0 %v3237_v56 }
  0xce   :  { %1745 = vmatmul.mubr.f32.vlgmr.msra.gmra.mrb[0].mxu1 %v3305_v13 }
  0xcf   :  { %2125 = vmatpush3.bf16.msra.mxu1 %v2881_v45  ;;  %1955 = vmatmul.mubr.f32.vlgmr.msra.gmra.mrb[0].mxu0 %v3306_v1 }
  0xd0   :  { %2269 = vmatpush3.bf16.msra.mxu0 %v2887_v21  ;;  %2126 = vmatprep.subr.bf16.mxu1 %v3237_v56 }
  0xd1   :  { %2270 = vmatprep.subr.bf16.mxu0 %v3237_v56  ;;  %1779 = vmatprep.mubr.msk.f32.mxu1 %vm2471_vm0, %v3252_v63 }
  0xd2   :  { %1989 = vmatprep.mubr.msk.f32.mxu0 %vm2471_vm0, %v3252_v63 }
  0xd3   :  { %2128 = vmatpush3.bf16.msra.mxu1 %v2893_v40 }
  0xd4   :  { %2272 = vmatpush3.bf16.msra.mxu0 %v2899_v41  ;;  %2129 = vmatprep.subr.bf16.mxu1 %v3237_v56 }
  0xd5   :  { %2273 = vmatprep.subr.bf16.mxu0 %v3237_v56 }
  0xd7   :  { %2131 = vmatpush3.bf16.msra.mxu1 %v2905_v59 }
  0xd8   :  { %2275 = vmatpush3.bf16.msra.mxu0 %v2911_v2  ;;  %2132 = vmatprep.subr.bf16.mxu1 %v3237_v56 }
  0xd9   :  { %2276 = vmatprep.subr.bf16.mxu0 %v3237_v56 }
  0xdb   :  { %2134 = vmatpush3.bf16.msra.mxu1 %v3307_v7 }
  0xdc   :  { %2278 = vmatpush3.bf16.msra.mxu0 %v3308_v60  ;;  %2135 = vmatprep.subr.bf16.mxu1 %v3237_v56 }
  0xdd   :  { %2279 = vmatprep.subr.bf16.mxu0 %v3237_v56 }
  0xdf   :  { %2137 = vmatpush3.bf16.msra.mxu1 %v3309_v29 }
  0xe0   :  { %2281 = vmatpush3.bf16.msra.mxu0 %v3310_v0  ;;  %2138 = vmatprep.subr.bf16.mxu1 %v3237_v56 }
  0xe1   :  { %2282 = vmatprep.subr.bf16.mxu0 %v3237_v56 }
  0xe3   :  { %2140 = vmatpush3.bf16.msra.mxu1 %v2943_v3 }
  0xe4   :  { %2284 = vmatpush3.bf16.msra.mxu0 %v2949_v19  ;;  %2141 = vmatprep.subr.bf16.mxu1 %v3237_v56 }
  0xe5   :  { %2285 = vmatprep.subr.bf16.mxu0 %v3237_v56 }
  0xe7   :  { %2143 = vmatpush3.bf16.msra.mxu1 %v2955_v42 }
  0xe8   :  { %2287 = vmatpush3.bf16.msra.mxu0 %v2959_v53  ;;  %2144 = vmatprep.subr.bf16.mxu1 %v3237_v56 }
  0xe9   :  { %2288 = vmatprep.subr.bf16.mxu0 %v3237_v56 }
  0xeb   :  { %2146 = vmatpush3.bf16.msra.mxu1 %v2961_v30 }
  0xec   :  { %2290 = vmatpush3.bf16.msra.mxu0 %v2963_v22  ;;  %2147 = vmatprep.subr.bf16.mxu1 %v3237_v56 }
  0xed   :  { %2291 = vmatprep.subr.bf16.mxu0 %v3237_v56 }
  0xee   :  { %1780 = vmatmul.mubr.f32.vlgmr.msra.gmra.mrb[0].mxu1 %v2667_v58 }
  0xef   :  { %2149 = vmatpush3.bf16.msra.mxu1 %v3288_v15  ;;  %1990 = vmatmul.mubr.f32.vlgmr.msra.gmra.mrb[0].mxu0 %v2686_v12 }
  0xf0   :  { %2293 = vmatpush3.bf16.msra.mxu0 %v3290_v23  ;;  %2150 = vmatprep.subr.bf16.mxu1 %v3237_v56 }
  0xf1   :  { %2294 = vmatprep.subr.bf16.mxu0 %v3237_v56  ;;  %1814 = vmatprep.mubr.msk.f32.mxu1 %vm2471_vm0, %v3252_v63 }
  0xf2   :  { %2024 = vmatprep.mubr.msk.f32.mxu0 %vm2471_vm0, %v3252_v63 }
  0xf3   :  { %2152 = vmatpush3.bf16.msra.mxu1 %v3291_v25 }
  0xf4   :  { %2296 = vmatpush3.bf16.msra.mxu0 %v3292_v26  ;;  %2153 = vmatprep.subr.bf16.mxu1 %v3237_v56 }
  0xf5   :  { %2297 = vmatprep.subr.bf16.mxu0 %v3237_v56 }
  0xf7   :  { %2155 = vmatpush3.bf16.msra.mxu1 %v3293_v31 }
  0xf8   :  { %2299 = vmatpush3.bf16.msra.mxu0 %v3294_v36  ;;  %2156 = vmatprep.subr.bf16.mxu1 %v3237_v56 }
  0xf9   :  { %2300 = vmatprep.subr.bf16.mxu0 %v3237_v56 }
  0xfb   :  { %2158 = vmatpush3.bf16.msra.mxu1 %v3295_v46 }
  0xfc   :  { %2302 = vmatpush3.bf16.msra.mxu0 %v3296_v47  ;;  %2159 = vmatprep.subr.bf16.mxu1 %v3237_v56 }
  0xfd   :  { %2303 = vmatprep.subr.bf16.mxu0 %v3237_v56 }
  0xff   :  { %2161 = vmatpush3.bf16.msra.mxu1 %v3297_v52 }
 0x100   :  { %2305 = vmatpush3.bf16.msra.mxu0 %v3298_v57  ;;  %2162 = vmatprep.subr.bf16.mxu1 %v3237_v56 }
 0x101   :  { %2306 = vmatprep.subr.bf16.mxu0 %v3237_v56 }
 0x103   :  { %2164 = vmatpush3.bf16.msra.mxu1 %v3299_v4 }
 0x104   :  { %2308 = vmatpush3.bf16.msra.mxu0 %v3300_v28  ;;  %2165 = vmatprep.subr.bf16.mxu1 %v3237_v56 }
 0x105   :  { %2309 = vmatprep.subr.bf16.mxu0 %v3237_v56 }
 0x107   :  { %2167 = vmatpush3.bf16.msra.mxu1 %v3301_v5 }
 0x108   :  { %2311 = vmatpush3.bf16.msra.mxu0 %v3302_v35  ;;  %2168 = vmatprep.subr.bf16.mxu1 %v3237_v56 }
 0x109   :  { %2312 = vmatprep.subr.bf16.mxu0 %v3237_v56 }
 0x10b   :  { %2170 = vmatpush3.bf16.msra.mxu1 %v3303_v48 }
 0x10c   :  { %2314 = vmatpush3.bf16.msra.mxu0 %v3304_v18 }
 0x10e   :  { %1815 = vmatmul.mubr.f32.vlgmr.msra.gmra.mrb[0].mxu1 %v2667_v58 }
 0x10f   :  { %2025 = vmatmul.mubr.f32.vlgmr.msra.gmra.mrb[0].mxu0 %v2686_v12 }
 0x1e1   :  { %v740_v63 = vpop.f32.mrb[0].mxu1 }
 0x1e2   :  { %v1381_v11 = vpop.f32.mrb[0].mxu0  ;;  %v1816_v45 = vpop.f32.mrb[1].mxu1 }
 0x1e3   :  { %v2315_v21 = vadd.f32 %v1381_v11, %v740_v63  ;;  %v2026_v40 = vpop.f32.mrb[1].mxu0 }
 0x1e5   :  { %1385 = vst [vmem:[#allocation10] sm:$0xff] %v2315_v21 }
 0x1e6   :  { %2445 = shalt.err (!%p2442_p8)
}
 0x1e7   :  { %s2446_s1 = scalar_lea.hbm %s3155_s4, 128 }
 0x1e8   :  { %p2447_p9 = scmp.ne.s32.totalorder %s3155_s4, %s2446_s1  ;;  %p2450_p10 = scmp.lt.u32.totalorder %s2446_s1, %s3155_s4 }
 0x1ea   :  { %p2452_p11 = pnand %p2450_p10, %p2447_p9 }
 0x1ec   :  { %2455 = shalt.err (!%p2452_p11)
}
 0x1ed   :  { %1395 = dma.vmem_to_hbm [thread:$0]  %s1393_s25, 128, %s3155_s4, [#allocation4]  }
 0x1ee   :  { %2462 = dma.done.wait [#allocation4], 128  }
 0x1ef   :  { %2463 = vsyncadd [#allocation4], 4294967168 }
 0x1f0   :  { %1399 = vsyncpa [#allocation3], 1 }
 0x1f1   :  { %1400 = vsyncpa [#allocation6], 1 }
 0x1f2   :  { %1401 = vsyncpa [#allocation9], 1 }
 0x1f3   :  { %1402 = vsyncpa [#allocation4], 1 }

</bundles_post_ra>
